<compile_context>
chip_gen: v7x
topology: tpu7x:2x2x1
jax: 0.10.0
libtpu: 0.0.40
codegen_flags: <defaults>
</compile_context>

<pallas_src>
import functools

import jax
import jax.numpy as jnp
from jax.experimental import pallas as pl
from jax.experimental.pallas import tpu as pltpu

NEG_BIG = -1e30                      # plain Python float (a jax array here would be captured)
_VMEM_LIMIT = 32 * 1024 * 1024       # safe on every generation (v7x physical VMEM = 64 MiB)


def _pick_tile(n, preferred, align):
    """Largest legal tile: `preferred` if it divides n and is `align`-aligned, else full n."""
    t = min(preferred, n)
    if t > 0 and n % t == 0 and t % align == 0:
        return t
    return n


# ------------------------- projection kernel (hT, alphaT) ------------------------- #

def _project_kernel(xT_ref, wT_ref, aT_ref, hT_ref, alphaT_ref):
    # hT = W^T @ xT : [HF, Tn]  (bf16 on the MXU, f32 accumulation; node dim on lanes)
    hT = jnp.dot(wT_ref[...], xT_ref[...], preferred_element_type=jnp.float32)
    # Fused per-head attention coefficients: alphaT = A^T @ hT : [2H, Tn]
    alphaT_ref[...] = jnp.dot(aT_ref[...], hT.astype(jnp.bfloat16),
                              preferred_element_type=jnp.float32)
    hT_ref[...] = hT.astype(hT_ref.dtype)                      # bf16 to HBM


def gat_project(xT, W, att_src, att_dst, *, heads, f_out):
    f_in, n = xT.shape
    hf = heads * f_out

    # Block-diagonal coefficient matrix A: [HF, 2H];
    # column h -> alpha_src head h, column H+h -> alpha_dst head h.
    A = jnp.zeros((hf, 2 * heads), jnp.float32)
    for hd in range(heads):
        A = A.at[hd * f_out:(hd + 1) * f_out, hd].set(att_src[hd])
        A = A.at[hd * f_out:(hd + 1) * f_out, heads + hd].set(att_dst[hd])

    tile_n = _pick_tile(n, 512, 128)
    grid = (n // tile_n,)

    hT, alphaT = pl.pallas_call(
        _project_kernel,
        out_shape=(jax.ShapeDtypeStruct((hf, n), jnp.bfloat16),
                   jax.ShapeDtypeStruct((2 * heads, n), jnp.float32)),
        grid=grid,
        in_specs=[pl.BlockSpec((f_in, tile_n), lambda i: (0, i)),
                  pl.BlockSpec((hf, f_in), lambda i: (0, 0)),
                  pl.BlockSpec((2 * heads, hf), lambda i: (0, 0))],
        out_specs=(pl.BlockSpec((hf, tile_n), lambda i: (0, i)),
                   pl.BlockSpec((2 * heads, tile_n), lambda i: (0, i))),
        compiler_params=pltpu.CompilerParams(
            dimension_semantics=("parallel",),
            vmem_limit_bytes=_VMEM_LIMIT),
    )(xT.astype(jnp.bfloat16),
      jnp.transpose(W).astype(jnp.bfloat16),
      jnp.transpose(A).astype(jnp.bfloat16))
    return hT, alphaT


# ----------------------------- attention kernel ----------------------------------- #

def _gat_attn_kernel(*refs, heads, f_out, negative_slope, apply_relu, fuse_linear):
    if fuse_linear:
        (adjT_ref, asrc_ref, adstT_ref, hT_ref, bias_ref, lwT_ref, lb_ref,
         o_ref, m_sc, l_sc, acc_sc) = refs
    else:
        (adjT_ref, asrc_ref, adstT_ref, hT_ref, bias_ref,
         o_ref, m_sc, l_sc, acc_sc) = refs
        lwT_ref = lb_ref = None

    s = pl.program_id(1)

    @pl.when(s == 0)
    def _init():
        m_sc[...] = jnp.full(m_sc.shape, NEG_BIG, jnp.float32)
        l_sc[...] = jnp.zeros(l_sc.shape, jnp.float32)
        acc_sc[...] = jnp.zeros(acc_sc.shape, jnp.float32)

    mask = adjT_ref[...] > 0                               # [Ts, Td] bool (int8 edge mask)
    neg_add = jnp.where(mask, 0.0, NEG_BIG)                # hoisted mask addend (once per tile)
    a_src = asrc_ref[...]                                  # [Ts, H] f32
    a_dstT = adstT_ref[...]                                # [H, Td] f32
    hT = hT_ref[...]                                       # [HF, Ts] bf16

    m_prev = m_sc[...]                                     # [H, Td]
    l_prev = l_sc[...]

    m_rows, l_rows = [], []
    for hd in range(heads):                                # static unroll over heads
        logits = a_src[:, hd:hd + 1] + a_dstT[hd:hd + 1, :]                # [Ts, Td]
        logits = jnp.where(logits > 0, logits, negative_slope * logits)    # LeakyReLU
        logits = logits + neg_add                                          # edge mask (additive)
        m_cur = jnp.max(logits, axis=0, keepdims=True)                     # [1, Td]
        m_p = m_prev[hd:hd + 1, :]
        m_n = jnp.maximum(m_p, m_cur)
        corr = jnp.exp(m_p - m_n)                                          # [1, Td]
        # The where-guard keeps fully-masked dst columns at p == 0 (exp(0) == 1 otherwise).
        p = jnp.where(mask, jnp.exp(logits - m_n), 0.0)                    # [Ts, Td] f32
        l_rows.append(corr * l_prev[hd:hd + 1, :] +
                      jnp.sum(p, axis=0, keepdims=True))
        m_rows.append(m_n)
        delta = jnp.dot(hT[hd * f_out:(hd + 1) * f_out, :],
                        p.astype(jnp.bfloat16),
                        preferred_element_type=jnp.float32)                # [F, Td]
        sl = slice(hd * f_out, (hd + 1) * f_out)
        acc_sc[sl, :] = corr * acc_sc[sl, :] + delta                       # lane-dense update

    m_sc[...] = jnp.concatenate(m_rows, axis=0)
    l_sc[...] = jnp.concatenate(l_rows, axis=0)

    @pl.when(s == pl.num_programs(1) - 1)
    def _finalize():
        # l == 0 only for nodes with no incident edges; the guard avoids inf/NaN.
        inv = pl.reciprocal(jnp.maximum(l_sc[...], 1e-20), approx=True)    # [H, Td] (EUP)
        rows = [acc_sc[hd * f_out:(hd + 1) * f_out, :] * inv[hd:hd + 1, :]
                for hd in range(heads)]
        out = jnp.concatenate(rows, axis=0) + bias_ref[...]                # [HF, Td]
        if apply_relu:
            out = jnp.maximum(out, 0.0)
        if fuse_linear:
            out = jnp.dot(lwT_ref[...], out.astype(jnp.bfloat16),
                          preferred_element_type=jnp.float32) + lb_ref[...]
        o_ref[...] = out.astype(o_ref.dtype)                               # lane-dense store


def gat_conv(xT, W, att_src, att_dst, bias, adjT, *, heads, f_out, apply_relu,
             lin_W=None, lin_b=None):
    """One GATConv layer (concat=True) on transposed activations.

    xT: [f_in, N].  Returns outT: [heads*f_out, N] bf16, or — when lin_W is given —
    the fused trailing Linear output [out_channels, N] f32.
    """
    _, n = xT.shape
    hf = heads * f_out
    fuse_linear = lin_W is not None

    # Kernel 1: node projection + attention coefficients (both transposed).
    hT, alphaT = gat_project(xT, W, att_src, att_dst, heads=heads, f_out=f_out)
    alpha_src = jnp.transpose(alphaT[:heads, :])        # [N, H]  source coeffs (node-major)
    alpha_dstT = alphaT[heads:, :]                      # [H, N]  target coeffs
    bias_col = bias.reshape(hf, 1).astype(jnp.float32)

    tile_d = _pick_tile(n, 256, 128)                    # dst nodes -> lanes
    tile_s = _pick_tile(n, 512, 128)                    # src reduction axis
    grid = (n // tile_d, n // tile_s)

    out_rows = lin_W.shape[1] if fuse_linear else hf
    out_dtype = jnp.float32 if fuse_linear else jnp.bfloat16

    in_specs = [
        pl.BlockSpec((tile_s, tile_d), lambda d, s: (s, d)),    # adjT [src, dst] int8
        pl.BlockSpec((tile_s, heads), lambda d, s: (s, 0)),     # alpha_src rows
        pl.BlockSpec((heads, tile_d), lambda d, s: (0, d)),     # alpha_dst^T cols
        pl.BlockSpec((hf, tile_s), lambda d, s: (0, s)),        # hT source cols (bf16)
        pl.BlockSpec((hf, 1), lambda d, s: (0, 0)),             # bias column
    ]
    args = [adjT.astype(jnp.int8), alpha_src, alpha_dstT, hT, bias_col]
    if fuse_linear:
        in_specs += [pl.BlockSpec((out_rows, hf), lambda d, s: (0, 0)),
                     pl.BlockSpec((out_rows, 1), lambda d, s: (0, 0))]
        args += [jnp.transpose(lin_W).astype(jnp.bfloat16),
                 lin_b.reshape(out_rows, 1).astype(jnp.float32)]

    kernel = functools.partial(_gat_attn_kernel, heads=heads, f_out=f_out,
                               negative_slope=0.2, apply_relu=apply_relu,
                               fuse_linear=fuse_linear)

    return pl.pallas_call(
        kernel,
        out_shape=jax.ShapeDtypeStruct((out_rows, n), out_dtype),
        grid=grid,
        in_specs=in_specs,
        out_specs=pl.BlockSpec((out_rows, tile_d), lambda d, s: (0, d)),
        scratch_shapes=[pltpu.VMEM((heads, tile_d), jnp.float32),   # running max
                        pltpu.VMEM((heads, tile_d), jnp.float32),   # running denominator
                        pltpu.VMEM((hf, tile_d), jnp.float32)],     # accumulator
        compiler_params=pltpu.CompilerParams(
            dimension_semantics=("parallel", "arbitrary"),
            vmem_limit_bytes=_VMEM_LIMIT),
    )(*args)


# ------------------------------- GAT module ---------------------------------------- #

def init_gat_params(key, in_channels, hidden_channels, out_channels, num_layers, heads):
    """Deterministic synthetic parameters matching GAT.__init__ shapes."""
    params = {"convs": []}

    def conv_params(k, f_in, f_out, h):
        k1, k2, k3 = jax.random.split(k, 3)
        return {
            "W": 0.2 * jax.random.normal(k1, (f_in, h * f_out), jnp.float32),
            "att_src": 0.2 * jax.random.normal(k2, (h, f_out), jnp.float32),
            "att_dst": 0.2 * jax.random.normal(k3, (h, f_out), jnp.float32),
            "bias": jnp.zeros((h * f_out,), jnp.float32),
            "heads": h, "f_out": f_out,
        }

    keys = jax.random.split(key, num_layers + 1)
    params["convs"].append(conv_params(keys[0], in_channels, hidden_channels, heads))
    for li in range(num_layers - 2):
        params["convs"].append(
            conv_params(keys[1 + li], hidden_channels * heads, hidden_channels, heads))
    params["convs"].append(
        conv_params(keys[num_layers - 1], hidden_channels * heads, hidden_channels, 1))

    kw, kb = jax.random.split(keys[num_layers], 2)
    params["lin_W"] = 0.2 * jax.random.normal(kw, (hidden_channels, out_channels), jnp.float32)
    params["lin_b"] = 0.1 * jax.random.normal(kb, (out_channels,), jnp.float32)
    return params


def gat_forward(x, adjT, params):
    """Matches GAT.forward with batch=None (no global_mean_pool)."""
    xT = jnp.transpose(x)                               # feature-major pipeline: [f_in, N]
    for p in params["convs"][:-1]:
        xT = gat_conv(xT, p["W"], p["att_src"], p["att_dst"], p["bias"], adjT,
                      heads=p["heads"], f_out=p["f_out"], apply_relu=True)
    p = params["convs"][-1]
    # Last GATConv (no relu) with the final nn.Linear fused into its epilogue.
    outT = gat_conv(xT, p["W"], p["att_src"], p["att_dst"], p["bias"], adjT,
                    heads=p["heads"], f_out=p["f_out"], apply_relu=False,
                    lin_W=params["lin_W"], lin_b=params["lin_b"])
    return jnp.transpose(outT)                          # [N, out_channels]


def build_dense_adj_t(edge_index, num_nodes):
    """int8 mask adj_t[src, dst] = 1 for each edge src -> dst, plus self loops."""
    src, dst = edge_index[0], edge_index[1]
    adj_t = jnp.zeros((num_nodes, num_nodes), jnp.int8)
    adj_t = adj_t.at[src, dst].set(1)
    return jnp.maximum(adj_t, jnp.eye(num_nodes, dtype=jnp.int8))


if __name__ == "__main__":
    key = jax.random.PRNGKey(0)

    # Small synthetic graph (sized to exercise both dst-parallel and src-reduction tiling).
    N = 512
    in_channels, hidden_channels, out_channels = 8, 8, 4
    num_layers, heads = 3, 4

    k_x, k_p = jax.random.split(key, 2)
    x = jax.random.normal(k_x, (N, in_channels), jnp.float32)

    # Deterministic ring graph (both directions) + extra long-range edges.
    idx = jnp.arange(N)
    src = jnp.concatenate([idx, (idx + 1) % N, (idx * 7) % N])
    dst = jnp.concatenate([(idx + 1) % N, idx, (idx * 13 + 5) % N])
    edge_index = jnp.stack([src, dst], axis=0)          # [2, E]
    adjT = build_dense_adj_t(edge_index, N)             # [src, dst] int8

    params = init_gat_params(k_p, in_channels, hidden_channels, out_channels,
                             num_layers, heads)

    out = gat_forward(x, adjT, params)
    out = jax.block_until_ready(out)
    assert out.shape == (N, out_channels), out.shape
    assert bool(jnp.all(jnp.isfinite(out)))
    print("KERNEL_OK")
</pallas_src>

<mosaic_0001>
module attributes {stable_mosaic.version = 11 : i64} {
  func.func @_project_kernel(%arg0: i32, %arg1: memref<8x512xbf16, #tpu.memory_space<vmem>>, %arg2: memref<32x8xbf16, #tpu.memory_space<vmem>>, %arg3: memref<8x32xbf16, #tpu.memory_space<vmem>>, %arg4: memref<32x512xbf16, #tpu.memory_space<vmem>>, %arg5: memref<8x512xf32, #tpu.memory_space<vmem>>) attributes {dimension_semantics = [#tpu.dimension_semantics<parallel>], iteration_bounds = array<i64: 1>, scalar_prefetch = 0 : i64, scratch_operands = 0 : i64, tpu.core_type = #tpu.core_type<tc>, window_params = [{transform_indices = @transform_0, window_bounds = array<i64: 8, 512>}, {pipeline_mode = #tpu.pipeline_mode<synchronous>, transform_indices = @transform_1, window_bounds = array<i64: 32, 8>}, {pipeline_mode = #tpu.pipeline_mode<synchronous>, transform_indices = @transform_2, window_bounds = array<i64: 8, 32>}, {transform_indices = @transform_3, window_bounds = array<i64: 32, 512>}, {transform_indices = @transform_4, window_bounds = array<i64: 8, 512>}]} {
    %c0 = arith.constant 0 : index
    %c0_0 = arith.constant 0 : index
    %0 = vector.load %arg2[%c0, %c0_0] : memref<32x8xbf16, #tpu.memory_space<vmem>>, vector<32x8xbf16>
    %c0_1 = arith.constant 0 : index
    %c0_2 = arith.constant 0 : index
    %1 = vector.load %arg1[%c0_1, %c0_2] : memref<8x512xbf16, #tpu.memory_space<vmem>>, vector<8x512xbf16>
    %cst = arith.constant dense<0.000000e+00> : vector<32x512xf32>
    %2 = tpu.matmul %0, %1, %cst {dimension_numbers = #tpu.dot_dimension_numbers<[1], [0], [0], [1], [0, 0, 1, 1], [], []>} : vector<32x8xbf16>, vector<8x512xbf16>, vector<32x512xf32> -> vector<32x512xf32>
    %c0_3 = arith.constant 0 : index
    %c0_4 = arith.constant 0 : index
    %3 = vector.load %arg3[%c0_3, %c0_4] : memref<8x32xbf16, #tpu.memory_space<vmem>>, vector<8x32xbf16>
    %4 = arith.truncf %2 : vector<32x512xf32> to vector<32x512xbf16>
    %cst_5 = arith.constant dense<0.000000e+00> : vector<8x512xf32>
    %5 = tpu.matmul %3, %4, %cst_5 {dimension_numbers = #tpu.dot_dimension_numbers<[1], [0], [0], [1], [0, 0, 1, 1], [], []>} : vector<8x32xbf16>, vector<32x512xbf16>, vector<8x512xf32> -> vector<8x512xf32>
    %c0_6 = arith.constant 0 : index
    %c0_7 = arith.constant 0 : index
    %6 = vector.load %arg5[%c0_6, %c0_7] : memref<8x512xf32, #tpu.memory_space<vmem>>, vector<8x512xf32>
    tpu.vector_store %arg5[%c0_6, %c0_7], %5 {strides = array<i32>} : memref<8x512xf32, #tpu.memory_space<vmem>>, vector<8x512xf32>,
    %7 = arith.truncf %2 : vector<32x512xf32> to vector<32x512xbf16>
    %c0_8 = arith.constant 0 : index
    %c0_9 = arith.constant 0 : index
    %8 = vector.load %arg4[%c0_8, %c0_9] : memref<32x512xbf16, #tpu.memory_space<vmem>>, vector<32x512xbf16>
    tpu.vector_store %arg4[%c0_8, %c0_9], %7 {strides = array<i32>} : memref<32x512xbf16, #tpu.memory_space<vmem>>, vector<32x512xbf16>,
    return
  }
  func.func @transform_0(%arg0: i32) -> (i32, i32) {
    %c0_i32 = arith.constant 0 : i32
    %c0_i32_0 = arith.constant 0 : i32
    return %c0_i32, %arg0 : i32, i32
  }
  func.func @transform_1(%arg0: i32) -> (i32, i32) {
    %c0_i32 = arith.constant 0 : i32
    %c0_i32_0 = arith.constant 0 : i32
    %c0_i32_1 = arith.constant 0 : i32
    return %c0_i32, %c0_i32_0 : i32, i32
  }
  func.func @transform_2(%arg0: i32) -> (i32, i32) {
    %c0_i32 = arith.constant 0 : i32
    %c0_i32_0 = arith.constant 0 : i32
    %c0_i32_1 = arith.constant 0 : i32
    return %c0_i32, %c0_i32_0 : i32, i32
  }
  func.func @transform_3(%arg0: i32) -> (i32, i32) {
    %c0_i32 = arith.constant 0 : i32
    %c0_i32_0 = arith.constant 0 : i32
    return %c0_i32, %arg0 : i32, i32
  }
  func.func @transform_4(%arg0: i32) -> (i32, i32) {
    %c0_i32 = arith.constant 0 : i32
    %c0_i32_0 = arith.constant 0 : i32
    return %c0_i32, %arg0 : i32, i32
  }
}

</mosaic_0001>

<bundles_post_ra>
// kernel: tpu_custom_call.1
= control target key start
LH: loop header
LB: loop body
LE: loop exit
PB: predicated region body
PF: predicated region fallthrough
CT: control target
= control target key end

     0   :  { %10 = vsyncpa [#allocation3], 0  ;;  %vm52_vm0 = vcmask 1043456   ;;  %v437_v6 = vmov 0   ;;  %s506_s0 = inlined_call_operand.vmem [shape: bf16[8,512], index: 0, kind: input, shape index: {}]   ;;  %s507_s1 = inlined_call_operand.vmem [shape: bf16[32,8], index: 1, kind: input, shape index: {}]   ;;  %s508_s2 = inlined_call_operand.vmem [shape: bf16[8,32], index: 2, kind: input, shape index: {}]   ;;  %s509_s3 = inlined_call_operand.hbm [shape: bf16[32,512], index: 3, kind: output, shape index: {0}]   ;;  %s510_s4 = inlined_call_operand.hbm [shape: f32[8,512], index: 4, kind: output, shape index: {1}]  }
   0x1   :  { %v23_v0 = vld [vmem:[%s506_s0] sm:$0xff]  ;;  %v24_v1 = vld [vmem:[%s506_s0 + $0x8] sm:$0xff]  ;;  %97 = vmatprep.mubr.bf16.mxu0 %v437_v6  ;;  %150 = vmatprep.mubr.bf16.mxu1 %v437_v6 }
   0x2   :  { %v351_v2 = vcombine.high %v23_v0, %v23_v0  ;;  %v353_v3 = vcombine.high %v24_v1, %v24_v1  ;;  %v350_v4 = vcombine.low %v23_v0, %v23_v0  ;;  %v352_v5 = vcombine.low %v24_v1, %v24_v1 }
   0x3   :  { %11 = vsyncpa [#allocation5], 0  ;;  %v387_v9 = vld [vmem:[%s507_s1] sm:$0xff]   ;;  %vm45_vm1 = vcmask 64512   ;;  %v388_v10 = vld [vmem:[%s507_s1 + $0x8] sm:$0xff]   ;;  %vm180_vm2 = vcmask 261120  }
   0x4   :  { %354 = vmatprep.subr.msk.bf16.mxu0 %vm52_vm0, %v351_v2  ;;  %357 = vmatprep.subr.msk.bf16.mxu1 %vm52_vm0, %v353_v3  ;;  %v54_v7 = vsel %vm52_vm0, %v350_v4, 0  ;;  %v60_v8 = vsel %vm52_vm0, %v352_v5, 0  ;;  %v171_v43 = vld [vmem:[%s508_s2] sm:$0xf]  ;;  %s438_s23 = smov [#allocation2]  }
   0x5   :  { %66 = vmatpush1.bf16.msra.mxu0 %v54_v7  ;;  %119 = vmatpush1.bf16.msra.mxu1 %v60_v8  ;;  %s323_s24 = sshll.u32 %s438_s23, 4  ;;  %s324_s24 = int_to_ptr.vmem [resolvable:$true] %s323_s24 }
   0x6   :  { %s389_s25 = scalar_lea.vmem %s324_s24, 1024  ;;  %p394_p1 = scmp.lt.s32.totalorder %s324_s24, %s324_s24 }
   0x7   :  { %p390_p0 = scmp.ne.s32.totalorder %s324_s24, %s389_s25  ;;  %p395_p2 = scmp.lt.s32.totalorder %s389_s25, %s389_s25 }
   0x8   :  { %355 = vmatmul.mubr.msk.bf16.vlgmr.msra.gmra.mrb[0].mxu0 %vm45_vm1, %v387_v9  ;;  %358 = vmatmul.mubr.msk.bf16.vlgmr.msra.gmra.mrb[0].mxu1 %vm45_vm1, %v387_v9 }
   0x9   :  { %107 = vmatprep.mubr.bf16.mxu0 %v437_v6  ;;  %160 = vmatprep.mubr.bf16.mxu1 %v437_v6  ;;  %p396_p3 = por %p395_p2, %p394_p1 }
   0xb   :  { %p397_p4 = pnand %p396_p3, %p390_p0 }
  0x10   :  { %356 = vmatmul.mubr.msk.bf16.gmra.mrb[4].mxu0 %vm45_vm1, %v388_v10  ;;  %359 = vmatmul.mubr.msk.bf16.gmra.mrb[4].mxu1 %vm45_vm1, %v388_v10 }
  0x11   :  { %216 = vmatprep.mubr.bf16.mxu0 %v437_v6  ;;  %257 = vmatprep.mubr.bf16.mxu1 %v437_v6 }
  0xdb   :  { %v99_v11 = vpop.f32.mrb[0].mxu0  ;;  %v152_v12 = vpop.f32.mrb[0].mxu1 }
  0xdc   :  { %v101_v13 = vpop.f32.mrb[1].mxu0  ;;  %v154_v14 = vpop.f32.mrb[1].mxu1 }
  0xdd   :  { %v370_v15 = vpack.c.bf16 %v101_v13, %v99_v11  ;;  %v371_v16 = vpack.c.bf16 %v154_v14, %v152_v12  ;;  %v103_v17 = vpop.f32.mrb[2].mxu0  ;;  %v156_v18 = vpop.f32.mrb[2].mxu1 }
  0xde   :  { %v172_v19 = vpack.c.bf16 %v103_v17, %v99_v11  ;;  %v174_v20 = vpack.c.bf16 %v156_v18, %v152_v12  ;;  %v105_v21 = vpop.f32.mrb[3].mxu0  ;;  %v158_v22 = vpop.f32.mrb[3].mxu1 }
  0xdf   :  { %310 = vst [vmem:[#allocation2] sm:$0xff] %v370_v15  ;;  %311 = vst [vmem:[#allocation2 + $0x8] sm:$0xff] %v371_v16  ;;  %v173_v23 = vpack.c.bf16 %v105_v21, %v101_v13  ;;  %v372_v24 = vpack.c.bf16 %v105_v21, %v103_v17  ;;  %v175_v25 = vpack.c.bf16 %v158_v22, %v154_v14 }
  0xe0   :  { %v373_v26 = vpack.c.bf16 %v158_v22, %v156_v18 }
  0xe1   :  { %312 = vst [vmem:[#allocation2 + $0x10] sm:$0xff] %v372_v24  ;;  %184 = vmatprep.subr.bf16.mxu0 %v173_v23  ;;  %225 = vmatprep.subr.bf16.mxu1 %v175_v25 }
  0xe2   :  { %313 = vst [vmem:[#allocation2 + $0x18] sm:$0xff] %v373_v26  ;;  %185 = vmatpush1.bf16.msra.mxu0 %v172_v19  ;;  %226 = vmatpush1.bf16.msra.mxu1 %v174_v20 }
  0xe3   :  { %v109_v27 = vpop.f32.mrb[4].mxu0  ;;  %v162_v28 = vpop.f32.mrb[4].mxu1 }
  0xe4   :  { %v111_v29 = vpop.f32.mrb[5].mxu0  ;;  %v164_v30 = vpop.f32.mrb[5].mxu1 }
  0xe5   :  { %v374_v31 = vpack.c.bf16 %v111_v29, %v109_v27  ;;  %v375_v32 = vpack.c.bf16 %v164_v30, %v162_v28  ;;  %v113_v33 = vpop.f32.mrb[6].mxu0  ;;  %v166_v34 = vpop.f32.mrb[6].mxu1 }
  0xe6   :  { %v176_v35 = vpack.c.bf16 %v113_v33, %v109_v27  ;;  %v178_v36 = vpack.c.bf16 %v166_v34, %v162_v28  ;;  %v115_v37 = vpop.f32.mrb[7].mxu0  ;;  %v168_v38 = vpop.f32.mrb[7].mxu1 }
  0xe7   :  { %314 = vst [vmem:[#allocation2 + $0x20] sm:$0xff] %v374_v31  ;;  %315 = vst [vmem:[#allocation2 + $0x28] sm:$0xff] %v375_v32  ;;  %v177_v39 = vpack.c.bf16 %v115_v37, %v111_v29  ;;  %v376_v40 = vpack.c.bf16 %v115_v37, %v113_v33  ;;  %v179_v41 = vpack.c.bf16 %v168_v38, %v164_v30 }
  0xe8   :  { %v377_v42 = vpack.c.bf16 %v168_v38, %v166_v34 }
  0xe9   :  { %316 = vst [vmem:[#allocation2 + $0x30] sm:$0xff] %v376_v40  ;;  %186 = vmatprep.subr.bf16.mxu0 %v177_v39  ;;  %227 = vmatprep.subr.bf16.mxu1 %v179_v41 }
  0xea   :  { %317 = vst [vmem:[#allocation2 + $0x38] sm:$0xff] %v377_v42  ;;  %187 = vmatpush1.bf16.msra.mxu0 %v176_v35  ;;  %228 = vmatpush1.bf16.msra.mxu1 %v178_v36 }
  0xed   :  { %360 = vmatmul.mubr.msk.bf16.vlgmr.msra.gmra.mrb[8].mxu0 %vm180_vm2, %v171_v43  ;;  %361 = vmatmul.mubr.msk.bf16.vlgmr.msra.gmra.mrb[8].mxu1 %vm180_vm2, %v171_v43 }
  0xee   :  { %400 = shalt.err (!%p397_p4)
}
  0xef   :  { %s401_s28 = scalar_lea.hbm %s509_s3, 1024 }
  0xf0   :  { %p402_p5 = scmp.ne.s32.totalorder %s509_s3, %s401_s28  ;;  %p405_p6 = scmp.lt.u32.totalorder %s401_s28, %s509_s3 }
  0xf2   :  { %p407_p7 = pnand %p405_p6, %p402_p5 }
  0xf4   :  { %410 = shalt.err (!%p407_p7)
}
  0xf5   :  { %s439_s6 = smov 256   ;;  %s440_s7 = smov 16  }
  0xf6   :  { %329 = dma.vmem_to_hbm [thread:$0]  %s324_s24, 1024, %s509_s3, [#allocation3], %s439_s6, %s439_s6, %s440_s7  }
  0xf7   :  { %s441_s10 = smov [#allocation4]  }
  0xf8   :  { %s336_s11 = sshll.u32 %s441_s10, 4  ;;  %s337_s11 = int_to_ptr.vmem [resolvable:$true] %s336_s11 }
  0xf9   :  { %s411_s12 = scalar_lea.vmem %s337_s11, 512  ;;  %p416_p9 = scmp.lt.s32.totalorder %s337_s11, %s337_s11 }
  0xfa   :  { %p412_p8 = scmp.ne.s32.totalorder %s337_s11, %s411_s12  ;;  %p417_p10 = scmp.lt.s32.totalorder %s411_s12, %s411_s12 }
  0xfc   :  { %p418_p11 = por %p417_p10, %p416_p9 }
  0xfe   :  { %p419_p12 = pnand %p418_p11, %p412_p8 }
 0x1c0   :  { %v218_v44 = vpop.f32.mrb[8].mxu0  ;;  %v259_v45 = vpop.f32.mrb[8].mxu1 }
 0x1c1   :  { %266 = vst [vmem:[#allocation4] sm:$0xff] %v218_v44  ;;  %268 = vst [vmem:[#allocation4 + $0x10] sm:$0xff] %v259_v45  ;;  %v220_v46 = vpop.f32.mrb[9].mxu0  ;;  %v261_v47 = vpop.f32.mrb[9].mxu1 }
 0x1c2   :  { %267 = vst [vmem:[#allocation4 + $0x8] sm:$0xff] %v220_v46  ;;  %269 = vst [vmem:[#allocation4 + $0x18] sm:$0xff] %v261_v47  ;;  %v222_v48 = vpop.f32.mrb[10].mxu0  ;;  %v263_v49 = vpop.f32.mrb[10].mxu1 }
 0x1c3   :  { %v223_v50 = vpop.f32.mrb[11].mxu0  ;;  %v264_v51 = vpop.f32.mrb[11].mxu1 }
 0x1c4   :  { %422 = shalt.err (!%p419_p12)
}
 0x1c5   :  { %s423_s14 = scalar_lea.hbm %s510_s4, 512 }
 0x1c6   :  { %p424_p13 = scmp.ne.s32.totalorder %s510_s4, %s423_s14  ;;  %p427_p0 = scmp.lt.u32.totalorder %s423_s14, %s510_s4 }
 0x1c8   :  { %p429_p1 = pnand %p427_p0, %p424_p13 }
 0x1ca   :  { %432 = shalt.err (!%p429_p1)
}
 0x1cb   :  { %339 = dma.vmem_to_hbm [thread:$0]  %s337_s11, 512, %s510_s4, [#allocation5]  }
 0x1cc   :  { %433 = dma.done.wait [#allocation3], 1024  }
 0x1cd   :  { %434 = vsyncadd [#allocation3], 4294966272 }
 0x1ce   :  { %435 = dma.done.wait [#allocation5], 512  }
 0x1cf   :  { %436 = vsyncadd [#allocation5], 4294966784 }
 0x1d0   :  { %346 = vsyncpa [#allocation3], 1 }
 0x1d1   :  { %347 = vsyncpa [#allocation5], 1 }

</bundles_post_ra>
